<compile_context>
chip_gen: v7x
topology: tpu7x:2x2x1
jax: 0.10.0
libtpu: 0.0.40
codegen_flags: <defaults>
</compile_context>

<pallas_src>
import math
from functools import partial

import jax
import jax.numpy as jnp
from jax.experimental import pallas as pl
from jax.experimental.pallas import tpu as pltpu


# ------------------------------ fused kernel ------------------------------- #

def _make_lang_gcn_kernel(num_gcn_layers, num_nodes, batch):
    """Fused kernel: L GCN layers + hoisted row gather + final nn.Linear.

    Kernel args:
      lang_ref : (batch, 1) int32  VMEM
      adj_ref  : (N, N)     f32    VMEM   (row-normalized D^-1 (A+I))
      emb_ref  : (N, D)     f32    VMEM   (feature cols zero-padded to D)
      w_ref    : (L+1, D, D) bf16  VMEM   (GCN weights; slab L holds W_final^T)
      b_ref    : (L+1, 1, D) f32   VMEM   (biases, zero-padded)
      out_ref  : (batch, D) f32    VMEM   (lane-dense; slice to out_dim outside)
    """

    def kernel(lang_ref, adj_ref, emb_ref, w_ref, b_ref, out_ref):
        adj = adj_ref[...]                    # (N, N) f32 — kept f32 for accuracy

        # One-hot rows of the requested languages: one vectorized VPU compare.
        node_ids = jax.lax.broadcasted_iota(jnp.int32, (batch, num_nodes), 1)
        onehot = (node_ids == lang_ref[...]).astype(jnp.float32)   # (B, N)

        state_f32 = emb_ref[...]              # (N, D) f32, zero-padded feature cols

        if num_gcn_layers == 0:
            # No GCN layers: gather the *unrounded* f32 embedding rows directly.
            gathered = jnp.dot(onehot, state_f32,
                               preferred_element_type=jnp.float32)      # (B, D)
        else:
            state_lo = state_f32.astype(jnp.bfloat16)
            for layer in range(num_gcn_layers):
                w = w_ref[layer]              # (D, D) bf16 (zero-padded)
                b = b_ref[layer]              # (1, D) f32  (zero-padded)
                # support = X @ W   (torch.mm) — cheaper contraction order first
                support = jnp.dot(state_lo, w,
                                  preferred_element_type=jnp.float32)   # (N, D)
                if layer + 1 < num_gcn_layers:
                    # output = A @ support  (torch.spmm with dense normalized adj)
                    agg = jnp.dot(adj, support,
                                  preferred_element_type=jnp.float32)
                    state_f32 = jnp.maximum(agg + b, 0.0)   # f32 epilogue (v5e-safe)
                    state_lo = state_f32.astype(jnp.bfloat16)
                else:
                    # Last layer: hoist the row gather above the adjacency matmul
                    # (row selection commutes with the row-wise bias/ReLU/Linear).
                    sel = jnp.dot(onehot, adj,
                                  preferred_element_type=jnp.float32)   # (B, N)
                    agg = jnp.dot(sel, support,
                                  preferred_element_type=jnp.float32)   # (B, D)
                    gathered = jnp.maximum(agg + b, 0.0)                 # (B, D)
                # dropout: identity (eval mode)

        # Final nn.Linear: y = x @ W^T + b  (W^T stored in weight-slab row L).
        w_fin = w_ref[num_gcn_layers]         # (D, D) bf16
        b_fin = b_ref[num_gcn_layers]         # (1, D) f32
        if num_gcn_layers == 0:
            out = jnp.dot(gathered, w_fin.astype(jnp.float32),
                          preferred_element_type=jnp.float32) + b_fin
        else:
            out = jnp.dot(gathered.astype(jnp.bfloat16), w_fin,
                          preferred_element_type=jnp.float32) + b_fin
        out_ref[...] = out                    # (B, D) lane-dense f32 store

    return kernel


# ------------------------------ Pallas wrapper ----------------------------- #

@partial(jax.jit, static_argnames=("out_dim",))
def lang_gcn_forward(lang_idx, adj, emb_pad, w_slab, b_slab, *, out_dim):
    """Fused LangGCN forward (inference): a single grid-less pallas_call."""
    num_layers = w_slab.shape[0] - 1
    num_nodes = adj.shape[0]
    batch = lang_idx.shape[0]
    d_pad = emb_pad.shape[1]

    kernel = _make_lang_gcn_kernel(num_layers, num_nodes, batch)
    vmem = pl.BlockSpec(memory_space=pltpu.MemorySpace.VMEM)

    out_pad = pl.pallas_call(
        kernel,
        out_shape=jax.ShapeDtypeStruct((batch, d_pad), jnp.float32),
        in_specs=[vmem] * 5,
        out_specs=vmem,
    )(
        lang_idx.reshape(batch, 1).astype(jnp.int32),
        adj, emb_pad, w_slab, b_slab,
    )
    # Kernel output is lane-dense (batch, D); slice the real output width here.
    return out_pad[:, :out_dim]


# --------------------------- parameter packing ------------------------------ #

def pack_lang_gcn_params(params, embedding, adj):
    """One-time packing (outside the hot path): two slabs + padded embedding."""
    gcn = params["gcn"]
    num_layers = len(gcn)

    dims = [embedding.shape[1]]
    dims += [w.shape[1] for (w, _) in gcn]
    dims += [params["final_w_t"].shape[1]]
    max_dim = max(dims)
    d_pad = max(128, ((max_dim + 127) // 128) * 128)   # lane-dense uniform width

    w_list = [w for (w, _) in gcn] + [params["final_w_t"]]
    b_list = [b for (_, b) in gcn] + [params["final_b"]]

    w_slab = jnp.zeros((num_layers + 1, d_pad, d_pad), jnp.bfloat16)
    b_slab = jnp.zeros((num_layers + 1, 1, d_pad), jnp.float32)
    for l, (w, b) in enumerate(zip(w_list, b_list)):
        w_slab = w_slab.at[l, : w.shape[0], : w.shape[1]].set(w.astype(jnp.bfloat16))
        b_slab = b_slab.at[l, 0, : b.shape[0]].set(b.astype(jnp.float32))

    emb_pad = jnp.zeros((embedding.shape[0], d_pad), jnp.float32)
    emb_pad = emb_pad.at[:, : embedding.shape[1]].set(embedding.astype(jnp.float32))

    adj_f32 = adj.astype(jnp.float32)   # adjacency stays f32 (main precision lever)
    return adj_f32, emb_pad, w_slab, b_slab


# --------------------------- parameters / test data ------------------------ #

def init_lang_gcn_params(key, input_dim, hidden_dims, output_dim):
    """Synthetic init mirroring GraphConvolutionLayer.reset_parameters / nn.Linear."""
    dim_list = [input_dim] + list(hidden_dims) + [output_dim]
    num_layer = len(hidden_dims)
    params = {"gcn": []}
    for tt in range(num_layer):
        fin, fout = dim_list[tt], dim_list[tt + 1]
        stdv = 1.0 / math.sqrt(fout)
        key, kw, kb = jax.random.split(key, 3)
        w = jax.random.uniform(kw, (fin, fout), jnp.float32, -stdv, stdv)
        b = jax.random.uniform(kb, (fout,), jnp.float32, -stdv, stdv)
        params["gcn"].append((w, b))
    fin, fout = dim_list[-2], dim_list[-1]
    stdv = 1.0 / math.sqrt(fin)
    key, kw, kb = jax.random.split(key, 3)
    # stored as W^T, shape [in, out], so the kernel does x @ w_t
    params["final_w_t"] = jax.random.uniform(kw, (fin, fout), jnp.float32, -stdv, stdv)
    params["final_b"] = jax.random.uniform(kb, (fout,), jnp.float32, -stdv, stdv)
    return params


def make_normalized_adj(key, num_nodes):
    """Deterministic symmetric graph -> row-normalized (A + I), dense float32."""
    a = jax.random.bernoulli(key, 0.2, (num_nodes, num_nodes)).astype(jnp.float32)
    a = jnp.maximum(a, a.T)                                   # symmetrize
    a = a * (1.0 - jnp.eye(num_nodes, dtype=jnp.float32))     # drop self loops
    a = a + jnp.eye(num_nodes, dtype=jnp.float32)             # adj + sp.eye
    rowsum = a.sum(axis=1, keepdims=True)
    r_inv = jnp.where(rowsum > 0, 1.0 / rowsum, 0.0)
    return a * r_inv                                          # D^-1 (A + I)


def lang_gcn_reference(params, embedding, adj, lang_idx):
    """Pure-JAX reference that emulates the kernel's bf16 weight/state rounding
    (adjacency and accumulation stay f32), so a tight tolerance can be used."""
    hp = jax.lax.Precision.HIGHEST
    f32 = jnp.float32
    adj = adj.astype(f32)
    state = embedding.astype(f32)
    for (w, b) in params["gcn"]:
        w_lo = w.astype(jnp.bfloat16).astype(f32)
        x_lo = state.astype(jnp.bfloat16).astype(f32)
        support = jnp.dot(x_lo, w_lo, precision=hp)
        state = jnp.maximum(jnp.dot(adj, support, precision=hp) + b.astype(f32), 0.0)
    w_fin = params["final_w_t"].astype(jnp.bfloat16).astype(f32)
    x = state.astype(jnp.bfloat16).astype(f32) if params["gcn"] else state
    state = jnp.dot(x, w_fin, precision=hp) + params["final_b"].astype(f32)
    return jnp.take(state, lang_idx, axis=0)


# ----------------------------------- main ----------------------------------- #

if __name__ == "__main__":
    key = jax.random.PRNGKey(0)

    # Small synthetic configuration consistent with the module:
    num_nodes = 32                 # |g.nodes|
    n2v_dim = 16                   # args.lgcn_n2v_dim
    n_char = 24                    # len(args.char_list)
    input_dim = n2v_dim + n_char   # 40
    hidden_dims = [32, 32]         # args.lgcn_hidden_dim, num_layer = 2
    output_dim = 16                # args.lgcn_output_dim
    batch = 2

    key, k_adj, k_n2v, k_par, k_langs = jax.random.split(key, 5)

    # embedding = concat([n2v_embedding, ph_embedding(0/1 mask)], axis=1)
    n2v_embedding = jax.random.normal(k_n2v, (num_nodes, n2v_dim), jnp.float32)
    ph_embedding = jnp.ones((num_nodes, n_char), jnp.float32)
    embedding = jnp.concatenate([n2v_embedding, ph_embedding], axis=1)

    adj = make_normalized_adj(k_adj, num_nodes)
    params = init_lang_gcn_params(k_par, input_dim, hidden_dims, output_dim)

    # langs -> vertex ids (lang2vid); synthetic deterministic indices
    lang_idx = jax.random.randint(k_langs, (batch,), 0, num_nodes)

    # One-time parameter packing (two slabs), then the fused kernel call.
    adj_f32, emb_pad, w_slab, b_slab = pack_lang_gcn_params(params, embedding, adj)
    out = lang_gcn_forward(lang_idx, adj_f32, emb_pad, w_slab, b_slab,
                           out_dim=output_dim)
    jax.block_until_ready(out)
    assert out.shape == (batch, output_dim), out.shape

    ref = lang_gcn_reference(params, embedding, adj, lang_idx)
    max_err = float(jnp.max(jnp.abs(out - ref)))
    assert jnp.allclose(out, ref, rtol=2e-2, atol=2e-2), max_err

    print("KERNEL_OK")
</pallas_src>

<mosaic_0001>
module attributes {stable_mosaic.version = 11 : i64} {
  func.func @kernel(%arg0: memref<2x1xi32, #tpu.memory_space<vmem>>, %arg1: memref<32x32xf32, #tpu.memory_space<vmem>>, %arg2: memref<32x128xf32, #tpu.memory_space<vmem>>, %arg3: memref<3x128x128xbf16, #tpu.memory_space<vmem>>, %arg4: memref<3x1x128xf32, #tpu.memory_space<vmem>>, %arg5: memref<2x128xf32, #tpu.memory_space<vmem>>) attributes {dimension_semantics = [], scalar_prefetch = 0 : i64, scratch_operands = 0 : i64, tpu.core_type = #tpu.core_type<tc>} {
    %c0 = arith.constant 0 : index
    %c0_0 = arith.constant 0 : index
    %0 = vector.load %arg1[%c0, %c0_0] : memref<32x32xf32, #tpu.memory_space<vmem>>, vector<32x32xf32>
    %1 = tpu.iota {dimensions = array<i32: 1>} : vector<2x32xi32>
    %c0_1 = arith.constant 0 : index
    %c0_2 = arith.constant 0 : index
    %2 = vector.load %arg0[%c0_1, %c0_2] : memref<2x1xi32, #tpu.memory_space<vmem>>, vector<2x1xi32>
    %3 = vector.broadcast %2 : vector<2x1xi32> to vector<2x32xi32>
    %4 = arith.cmpi eq, %1, %3 : vector<2x32xi32>
    %5 = arith.extui %4 : vector<2x32xi1> to vector<2x32xi32>
    %6 = arith.sitofp %5 : vector<2x32xi32> to vector<2x32xf32>
    %c0_3 = arith.constant 0 : index
    %c0_4 = arith.constant 0 : index
    %7 = vector.load %arg2[%c0_3, %c0_4] : memref<32x128xf32, #tpu.memory_space<vmem>>, vector<32x128xf32>
    %8 = arith.truncf %7 : vector<32x128xf32> to vector<32x128xbf16>
    %c0_5 = arith.constant 0 : index
    %c0_6 = arith.constant 0 : index
    %c0_7 = arith.constant 0 : index
    %9 = vector.load %arg3[%c0_5, %c0_6, %c0_7] : memref<3x128x128xbf16, #tpu.memory_space<vmem>>, vector<1x128x128xbf16>
    %10 = vector.shape_cast %9 : vector<1x128x128xbf16> to vector<128x128xbf16>
    %c0_8 = arith.constant 0 : index
    %c0_9 = arith.constant 0 : index
    %c0_10 = arith.constant 0 : index
    %11 = vector.load %arg4[%c0_8, %c0_9, %c0_10] : memref<3x1x128xf32, #tpu.memory_space<vmem>>, vector<1x1x128xf32>
    %12 = vector.shape_cast %11 : vector<1x1x128xf32> to vector<1x128xf32>
    %cst = arith.constant dense<0.000000e+00> : vector<32x128xf32>
    %13 = tpu.matmul %8, %10, %cst {dimension_numbers = #tpu.dot_dimension_numbers<[1], [0], [0], [1], [0, 0, 1, 1], [], []>} : vector<32x128xbf16>, vector<128x128xbf16>, vector<32x128xf32> -> vector<32x128xf32>
    %cst_11 = arith.constant dense<0.000000e+00> : vector<32x128xf32>
    %14 = tpu.matmul %0, %13, %cst_11 {dimension_numbers = #tpu.dot_dimension_numbers<[1], [0], [0], [1], [0, 0, 1, 1], [], []>} : vector<32x32xf32>, vector<32x128xf32>, vector<32x128xf32> -> vector<32x128xf32>
    %15 = vector.broadcast %12 : vector<1x128xf32> to vector<32x128xf32>
    %16 = arith.addf %14, %15 : vector<32x128xf32>
    %cst_12 = arith.constant 0.000000e+00 : f32
    %17 = vector.broadcast %cst_12 : f32 to vector<32x128xf32>
    %18 = arith.maximumf %16, %17 : vector<32x128xf32>
    %19 = arith.truncf %18 : vector<32x128xf32> to vector<32x128xbf16>
    %c1 = arith.constant 1 : index
    %c0_13 = arith.constant 0 : index
    %c0_14 = arith.constant 0 : index
    %20 = vector.load %arg3[%c1, %c0_13, %c0_14] : memref<3x128x128xbf16, #tpu.memory_space<vmem>>, vector<1x128x128xbf16>
    %21 = vector.shape_cast %20 : vector<1x128x128xbf16> to vector<128x128xbf16>
    %c1_15 = arith.constant 1 : index
    %c0_16 = arith.constant 0 : index
    %c0_17 = arith.constant 0 : index
    %22 = vector.load %arg4[%c1_15, %c0_16, %c0_17] : memref<3x1x128xf32, #tpu.memory_space<vmem>>, vector<1x1x128xf32>
    %23 = vector.shape_cast %22 : vector<1x1x128xf32> to vector<1x128xf32>
    %cst_18 = arith.constant dense<0.000000e+00> : vector<32x128xf32>
    %24 = tpu.matmul %19, %21, %cst_18 {dimension_numbers = #tpu.dot_dimension_numbers<[1], [0], [0], [1], [0, 0, 1, 1], [], []>} : vector<32x128xbf16>, vector<128x128xbf16>, vector<32x128xf32> -> vector<32x128xf32>
    %cst_19 = arith.constant dense<0.000000e+00> : vector<2x32xf32>
    %25 = tpu.matmul %6, %0, %cst_19 {dimension_numbers = #tpu.dot_dimension_numbers<[1], [0], [0], [1], [0, 0, 1, 1], [], []>} : vector<2x32xf32>, vector<32x32xf32>, vector<2x32xf32> -> vector<2x32xf32>
    %cst_20 = arith.constant dense<0.000000e+00> : vector<2x128xf32>
    %26 = tpu.matmul %25, %24, %cst_20 {dimension_numbers = #tpu.dot_dimension_numbers<[1], [0], [0], [1], [0, 0, 1, 1], [], []>} : vector<2x32xf32>, vector<32x128xf32>, vector<2x128xf32> -> vector<2x128xf32>
    %27 = vector.broadcast %23 : vector<1x128xf32> to vector<2x128xf32>
    %28 = arith.addf %26, %27 : vector<2x128xf32>
    %cst_21 = arith.constant 0.000000e+00 : f32
    %29 = vector.broadcast %cst_21 : f32 to vector<2x128xf32>
    %30 = arith.maximumf %28, %29 : vector<2x128xf32>
    %c2 = arith.constant 2 : index
    %c0_22 = arith.constant 0 : index
    %c0_23 = arith.constant 0 : index
    %31 = vector.load %arg3[%c2, %c0_22, %c0_23] : memref<3x128x128xbf16, #tpu.memory_space<vmem>>, vector<1x128x128xbf16>
    %32 = vector.shape_cast %31 : vector<1x128x128xbf16> to vector<128x128xbf16>
    %c2_24 = arith.constant 2 : index
    %c0_25 = arith.constant 0 : index
    %c0_26 = arith.constant 0 : index
    %33 = vector.load %arg4[%c2_24, %c0_25, %c0_26] : memref<3x1x128xf32, #tpu.memory_space<vmem>>, vector<1x1x128xf32>
    %34 = vector.shape_cast %33 : vector<1x1x128xf32> to vector<1x128xf32>
    %35 = arith.truncf %30 : vector<2x128xf32> to vector<2x128xbf16>
    %cst_27 = arith.constant dense<0.000000e+00> : vector<2x128xf32>
    %36 = tpu.matmul %35, %32, %cst_27 {dimension_numbers = #tpu.dot_dimension_numbers<[1], [0], [0], [1], [0, 0, 1, 1], [], []>} : vector<2x128xbf16>, vector<128x128xbf16>, vector<2x128xf32> -> vector<2x128xf32>
    %37 = vector.broadcast %34 : vector<1x128xf32> to vector<2x128xf32>
    %38 = arith.addf %36, %37 : vector<2x128xf32>
    %c0_28 = arith.constant 0 : index
    %c0_29 = arith.constant 0 : index
    %39 = vector.load %arg5[%c0_28, %c0_29] : memref<2x128xf32, #tpu.memory_space<vmem>>, vector<2x128xf32>
    tpu.vector_store %arg5[%c0_28, %c0_29], %38 {strides = array<i32>} : memref<2x128xf32, #tpu.memory_space<vmem>>, vector<2x128xf32>,
    return
  }
}

</mosaic_0001>

<bundles_post_ra>
// kernel: lang_gcn_forward.1
= control target key start
LH: loop header
LB: loop body
LE: loop exit
PB: predicated region body
PF: predicated region fallthrough
CT: control target
= control target key end

     0   :  { %10 = vsyncpa [#allocation3], 0  ;;  %s1154_s0 = inlined_call_operand.vmem [shape: s32[2,1], index: 0, kind: input, shape index: {}]   ;;  %s1155_s1 = inlined_call_operand.hbm [shape: f32[32,32], index: 1, kind: input, shape index: {}]   ;;  %s1156_s2 = inlined_call_operand.hbm [shape: f32[32,128], index: 2, kind: input, shape index: {}]   ;;  %s1157_s3 = inlined_call_operand.hbm [shape: bf16[3,128,128], index: 3, kind: input, shape index: {}]   ;;  %s1158_s4 = inlined_call_operand.vmem [shape: f32[3,1,128], index: 4, kind: input, shape index: {}]   ;;  %s1159_s5 = inlined_call_operand.hbm [shape: f32[2,128], index: 5, kind: output, shape index: {}]  }
   0x1   :  { %11 = vsyncpa [#allocation6], 0 }
   0x2   :  { %12 = vsyncpa [#allocation4], 0  ;;  %s1036_s18 = smov [#allocation5]   ;;  %s1037_s20 = smov [#allocation2]  }
   0x3   :  { %s32_s19 = sshll.u32 %s1036_s18, 4  ;;  %s20_s21 = sshll.u32 %s1037_s20, 4  ;;  %s33_s19 = int_to_ptr.vmem [resolvable:$true] %s32_s19  ;;  %s1078_s21 = int_to_ptr.vmem [resolvable:$true] %s20_s21 }
   0x4   :  { %s942_s24 = scalar_lea.hbm %s1156_s2, 512 }
   0x5   :  { %p943_p0 = scmp.ne.s32.totalorder %s1156_s2, %s942_s24  ;;  %p946_p1 = scmp.lt.u32.totalorder %s942_s24, %s1156_s2 }
   0x7   :  { %p948_p2 = pnand %p946_p1, %p943_p0 }
   0x9   :  { %951 = shalt.err (!%p948_p2)
}
   0xa   :  { %s952_s29 = scalar_lea.vmem %s33_s19, 512  ;;  %p957_p4 = scmp.lt.s32.totalorder %s33_s19, %s33_s19 }
   0xb   :  { %p953_p3 = scmp.ne.s32.totalorder %s33_s19, %s952_s29  ;;  %p958_p5 = scmp.lt.s32.totalorder %s952_s29, %s952_s29 }
   0xd   :  { %p959_p6 = por %p958_p5, %p957_p4 }
   0xf   :  { %p960_p7 = pnand %p959_p6, %p953_p3 }
  0x11   :  { %963 = shalt.err (!%p960_p7)
}
  0x12   :  { %s1038_s30 = smov 128   ;;  %s1039_s6 = smov 8  }
  0x13   :  { %38 = dma.hbm_to_vmem [thread:$0]  %s1156_s2, 512, %s33_s19, [#allocation6], %s1038_s30, %s1038_s30, %s1039_s6  }
  0x14   :  { %s964_s11 = scalar_lea.hbm %s1155_s1, 512 }
  0x15   :  { %p965_p8 = scmp.ne.s32.totalorder %s1155_s1, %s964_s11  ;;  %p968_p9 = scmp.lt.u32.totalorder %s964_s11, %s1155_s1 }
  0x17   :  { %p970_p10 = pnand %p968_p9, %p965_p8 }
  0x19   :  { %973 = shalt.err (!%p970_p10)
}
  0x1a   :  { %s974_s16 = scalar_lea.vmem %s1078_s21, 512  ;;  %p979_p12 = scmp.lt.s32.totalorder %s1078_s21, %s1078_s21 }
  0x1b   :  { %p975_p11 = scmp.ne.s32.totalorder %s1078_s21, %s974_s16  ;;  %p980_p13 = scmp.lt.s32.totalorder %s974_s16, %s974_s16 }
  0x1d   :  { %p981_p0 = por %p980_p13, %p979_p12 }
  0x1f   :  { %p982_p1 = pnand %p981_p0, %p975_p11 }
  0x21   :  { %985 = shalt.err (!%p982_p1)
}
  0x22   :  { %26 = dma.hbm_to_vmem [thread:$0]  %s1155_s1, 512, %s1078_s21, [#allocation3], %s1038_s30, %s1038_s30, %s1039_s6  }
  0x23   :  { %s1040_s18 = smov [#allocation7]   ;;  %s986_s23 = scalar_lea.hbm %s1157_s3, 3072 }
  0x24   :  { %s44_s19 = sshll.u32 %s1040_s18, 4  ;;  %p987_p2 = scmp.ne.s32.totalorder %s1157_s3, %s986_s23  ;;  %s45_s19 = int_to_ptr.vmem [resolvable:$true] %s44_s19 }
  0x25   :  { %p990_p3 = scmp.lt.u32.totalorder %s986_s23, %s1157_s3 }
  0x27   :  { %p992_p4 = pnand %p990_p3, %p987_p2 }
  0x29   :  { %995 = shalt.err (!%p992_p4)
}
  0x2a   :  { %s996_s28 = scalar_lea.vmem %s45_s19, 3072  ;;  %p1001_p6 = scmp.lt.s32.totalorder %s45_s19, %s45_s19 }
  0x2b   :  { %p997_p5 = scmp.ne.s32.totalorder %s45_s19, %s996_s28  ;;  %p1002_p7 = scmp.lt.s32.totalorder %s996_s28, %s996_s28 }
  0x2d   :  { %p1003_p8 = por %p1002_p7, %p1001_p6 }
  0x2f   :  { %p1004_p9 = pnand %p1003_p8, %p997_p5 }
  0x31   :  { %1007 = shalt.err (!%p1004_p9)
}
  0x32   :  { %s1041_s1 = smov 64   ;;  %s1042_s21 = smov 4  }
  0x33   :  { %50 = dma.hbm_to_vmem [thread:$0]  %s1157_s3, 3072, %s45_s19, [#allocation6], %s1041_s1, %s1041_s1, %s1042_s21  }
  0x34   :  { %1030 = dma.done.wait [#allocation3], 512  }
  0x35   :  { %1031 = vsyncadd [#allocation3], 4294966784 }
  0x36   :  { %1032 = dma.done.wait [#allocation6], 3584  }
  0x37   :  { %1033 = vsyncadd [#allocation6], 4294963712  ;;  %v918_v0 = vld [vmem:[#allocation7] sm:$0xff]   ;;  %v919_v1 = vld [vmem:[#allocation7 + $0x8] sm:$0xff]   ;;  %vm202_vm0 = vcmask 261120   ;;  %v1043_v18 = vmov 0   ;;  %v67_v35 = vlaneseq }
  0x38   :  { %789 = vmatprep.subr.bf16.mxu0 %v918_v0  ;;  %v920_v2 = vld [vmem:[#allocation7 + $0x10] sm:$0xff]   ;;  %v921_v3 = vld [vmem:[#allocation7 + $0x18] sm:$0xff]   ;;  %v76_v4 = vld [vmem:[#allocation5] sm:$0xff]  ;;  %917 = vset.pattern.permute.xlu0 %v1043_v18  ;;  %v1044_v36 = vmov 0.0|0.0   ;;  %vm1045_vm1 = vmmov 0   ;;  %v1046_v38 = vmov 0.0  }
  0x39   :  { %790 = vmatpush3.bf16.msra.mxu0 %v918_v0  ;;  %v77_v5 = vld [vmem:[#allocation5 + $0x8] sm:$0xff]  ;;  %v922_v7 = vld [vmem:[#allocation7 + $0x20] sm:$0xff]   ;;  %v924_v9 = vld [vmem:[#allocation7 + $0x30] sm:$0xff]   ;;  %v68_v40 = vand.u32 127, %v67_v35  ;;  %s1047_s12 = smov [#allocation8]  }
  0x3a   :  { %791 = vmatprep.subr.bf16.mxu0 %v919_v1  ;;  %v80_v6 = vpack.c.bf16 %v77_v5, %v76_v4  ;;  %v923_v8 = vld [vmem:[#allocation7 + $0x28] sm:$0xff]   ;;  %v925_v10 = vld [vmem:[#allocation7 + $0x38] sm:$0xff]   ;;  %v78_v11 = vld [vmem:[#allocation5 + $0x10] sm:$0xff]  ;;  %s696_s13 = sshll.u32 %s1047_s12, 4  ;;  %s697_s13 = int_to_ptr.vmem [resolvable:$true] %s696_s13 }
  0x3b   :  { %v79_v12 = vld [vmem:[#allocation5 + $0x18] sm:$0xff]  ;;  %v63_v14 = vld [vmem:[#allocation2] sm:$0xff]  ;;  %v927_v17 = vld [vmem:[#allocation7 + $0x48] sm:$0xff]   ;;  %s1008_s14 = scalar_lea.vmem %s697_s13, 32  ;;  %p1013_p11 = scmp.lt.s32.totalorder %s697_s13, %s697_s13 }
  0x3c   :  { %805 = vmatprep.mubr.bf16.mxu0 %v80_v6  ;;  %v81_v13 = vpack.c.bf16 %v79_v12, %v78_v11  ;;  %v69_v15 = vld [vmem:[%s1154_s0] sm:$0x3]  ;;  %v928_v19 = vld [vmem:[#allocation7 + $0x50] sm:$0xff]   ;;  %v929_v20 = vld [vmem:[#allocation7 + $0x58] sm:$0xff]   ;;  %p1009_p10 = scmp.ne.s32.totalorder %s697_s13, %s1008_s14  ;;  %p1014_p12 = scmp.lt.s32.totalorder %s1008_s14, %s1008_s14 }
  0x3d   :  { %792 = vmatpush3.bf16.msra.mxu0 %v919_v1  ;;  %v926_v16 = vld [vmem:[#allocation7 + $0x40] sm:$0xff]   ;;  %71 = vperm.xlu0 %917, %v69_v15   ;;  %v64_v28 = vld [vmem:[#allocation2 + $0x8] sm:$0xff]  ;;  %v65_v29 = vld [vmem:[#allocation2 + $0x10] sm:$0xff] }
  0x3e   :  { %793 = vmatprep.subr.bf16.mxu0 %v920_v2  ;;  %823 = vmatprep.subr.bf16.mxu1 %v926_v16  ;;  %v930_v21 = vld [vmem:[#allocation7 + $0x60] sm:$0xff]   ;;  %v66_v30 = vld [vmem:[#allocation2 + $0x18] sm:$0xff]  ;;  %v931_v31 = vld [vmem:[#allocation7 + $0x68] sm:$0xff]   ;;  %v894_v34 = vpack.c.bf16 %v64_v28, %v63_v14  ;;  %p1015_p13 = por %p1014_p12, %p1013_p11 }
  0x3f   :  { %824 = vmatpush3.bf16.msra.mxu1 %v926_v16  ;;  %v932_v32 = vld [vmem:[#allocation7 + $0x70] sm:$0xff]   ;;  %v933_v33 = vld [vmem:[#allocation7 + $0x78] sm:$0xff]   ;;  %v897_v39 = vpack.c.bf16 %v66_v30, %v65_v29  ;;  %v715_v42 = vld [vmem:[%s1158_s4] ss:$0 sm:$0xff] }
  0x40   :  { %825 = vmatprep.subr.bf16.mxu1 %v927_v17  ;;  %v934_v59 = vld [vmem:[#allocation7 + $0x80] sm:$0xff]   ;;  %v935_v60 = vld [vmem:[#allocation7 + $0x88] sm:$0xff]   ;;  %v936_v61 = vld [vmem:[#allocation7 + $0x90] sm:$0xff]   ;;  %p1016_p0 = pnand %p1015_p13, %p1009_p10 }
  0x41   :  { %794 = vmatpush3.bf16.msra.mxu0 %v920_v2  ;;  %v937_v62 = vld [vmem:[#allocation7 + $0x98] sm:$0xff]   ;;  %v938_v63 = vld [vmem:[#allocation7 + $0xa0] sm:$0xff]   ;;  %v939_v0 = vld [vmem:[#allocation7 + $0xa8] sm:$0xff]  }
  0x42   :  { %795 = vmatprep.subr.bf16.mxu0 %v921_v3  ;;  %v733_v15 = vld [vmem:[%s1158_s4 + $0x2] ss:$0 sm:$0xff] }
  0x43   :  { %826 = vmatpush3.bf16.msra.mxu1 %v927_v17 }
  0x44   :  { %827 = vmatprep.subr.bf16.mxu1 %v928_v19 }
  0x45   :  { %796 = vmatpush3.bf16.msra.mxu0 %v921_v3 }
  0x46   :  { %797 = vmatprep.subr.bf16.mxu0 %v922_v7 }
  0x47   :  { %828 = vmatpush3.bf16.msra.mxu1 %v928_v19 }
  0x48   :  { %829 = vmatprep.subr.bf16.mxu1 %v929_v20 }
  0x49   :  { %798 = vmatpush3.bf16.msra.mxu0 %v922_v7  ;;  %v940_v7 = vld [vmem:[#allocation7 + $0xb0] sm:$0xff]  }
  0x4a   :  { %799 = vmatprep.subr.bf16.mxu0 %v923_v8 }
  0x4b   :  { %830 = vmatpush3.bf16.msra.mxu1 %v929_v20 }
  0x4c   :  { %831 = vmatprep.subr.bf16.mxu1 %v930_v21 }
  0x4d   :  { %800 = vmatpush3.bf16.msra.mxu0 %v923_v8  ;;  %v941_v8 = vld [vmem:[#allocation7 + $0xb8] sm:$0xff]  }
  0x4e   :  { %801 = vmatprep.subr.bf16.mxu0 %v924_v9 }
  0x4f   :  { %832 = vmatpush3.bf16.msra.mxu1 %v930_v21 }
  0x50   :  { %833 = vmatprep.subr.bf16.mxu1 %v931_v31 }
  0x51   :  { %802 = vmatpush3.bf16.msra.mxu0 %v924_v9  ;;  %v730_v9 = vld [vmem:[%s1158_s4 + $0x1] ss:$0 sm:$0xff] }
  0x52   :  { %803 = vmatprep.subr.bf16.mxu0 %v925_v10 }
  0x53   :  { %834 = vmatpush3.bf16.msra.mxu1 %v931_v31 }
  0x54   :  { %835 = vmatprep.subr.bf16.mxu1 %v932_v32 }
  0x55   :  { %804 = vmatpush3.bf16.msra.mxu0 %v925_v10 }
  0x57   :  { %836 = vmatpush3.bf16.msra.mxu1 %v932_v32 }
  0x58   :  { %806 = vmatmul.mubr.bf16.vlgmr.msra.gmra.mrb[0].mxu0 %v81_v13  ;;  %837 = vmatprep.subr.bf16.mxu1 %v933_v33 }
  0x59   :  { %817 = vmatprep.mubr.msk.f32.mxu0 %vm202_vm0, %v63_v14 }
  0x5b   :  { %838 = vmatpush3.bf16.msra.mxu1 %v933_v33 }
  0x5c   :  { %865 = vmatprep.subr.bf16.mxu1 %v1046_v38 }
  0xbc   :  { %v72_v37 = vpop.permute.xlu0 %71 }
  0xbd   :  { %vm73_vm2 = vcmp.eq.s32.totalorder %v68_v40, %v72_v37 }
  0xbe   :  { %v706_v41 = vsel %vm73_vm2, 1.0, %v1046_v38 }
 0x12b   :  { %v807_v22 = vpop.f32.mrb[0].mxu0 }
 0x12c   :  { %v181_v23 = vpop.f32.mrb[1].mxu0 }
 0x12d   :  { %v808_v24 = vpop.f32.mrb[2].mxu0 }
 0x12e   :  { %v889_v25 = vpack.c.bf16 %v808_v24, %v807_v22  ;;  %v184_v26 = vpop.f32.mrb[3].mxu0 }
 0x12f   :  { %v885_v27 = vpack.c.bf16 %v184_v26, %v181_v23 }
 0x131   :  { %886 = vmatprep.subr.bf16.mxu0 %v885_v27 }
 0x132   :  { %888 = vmatpush3.bf16.msra.mxu0 %v885_v27 }
 0x133   :  { %890 = vmatprep.subr.bf16.mxu0 %v889_v25 }
 0x136   :  { %892 = vmatpush3.bf16.msra.mxu0 %v889_v25 }
 0x137   :  { %893 = vmatprep.subr.bf16.mxu0 %v1044_v36 }
 0x139   :  { %818 = vmatmul.mubr.msk.f32.vlgmr.msra.gmra.mrb[4].mxu0 %vm202_vm0, %v64_v28 }
 0x13a   :  { %820 = vmatprep.mubr.msk.f32.mxu0 %vm202_vm0, %v65_v29  ;;  %895 = vmatpush3.bf16.msra.mxu0 %v894_v34 }
 0x13b   :  { %896 = vmatprep.subr.bf16.mxu0 %v1044_v36 }
 0x13d   :  { %821 = vmatmul.mubr.msk.f32.gmra.mrb[6].mxu0 %vm202_vm0, %v66_v30 }
 0x13e   :  { %851 = vmatprep.mubr.msk.f32.mxu0 %vm1045_vm1, %v1046_v38  ;;  %898 = vmatpush3.bf16.msra.mxu0 %v897_v39 }
 0x13f   :  { %899 = vmatprep.subr.bf16.mxu0 %v1044_v36 }
 0x141   :  { %852 = vmatmul.mubr.msk.f32.vlgmr.msra.gmra.mrb[8].mxu0 %vm202_vm0, %v706_v41 }
 0x142   :  { %862 = vmatprep.mubr.msk.f32.mxu0 %vm1045_vm1, %v1046_v38 }
 0x20c   :  { %v819_v43 = vpop.f32.mrb[4].mxu0 }
 0x20d   :  { %v287_v44 = vadd.f32 %v819_v43, %v715_v42  ;;  %v281_v45 = vpop.f32.mrb[5].mxu0 }
 0x20e   :  { %v282_v46 = vadd.f32 %v715_v42, %v281_v45 }
 0x20f   :  { %v301_v47 = vmax.f32 %v287_v44, 0.0 }
 0x210   :  { %v300_v48 = vmax.f32 %v282_v46, 0.0  ;;  %v822_v49 = vpop.f32.mrb[6].mxu0 }
 0x211   :  { %v297_v50 = vadd.f32 %v822_v49, %v715_v42  ;;  %v291_v51 = vpop.f32.mrb[7].mxu0 }
 0x212   :  { %v292_v52 = vadd.f32 %v715_v42, %v291_v51  ;;  %v304_v53 = vpack.c.bf16 %v301_v47, %v300_v48 }
 0x213   :  { %v303_v54 = vmax.f32 %v297_v50, 0.0 }
 0x214   :  { %v302_v55 = vmax.f32 %v292_v52, 0.0  ;;  %839 = vmatprep.mubr.bf16.mxu1 %v304_v53  ;;  %v491_v57 = vpop.f32.mrb[8].mxu0 }
 0x215   :  { %v853_v58 = vpop.f32.mrb[9].mxu0 }
 0x216   :  { %v305_v56 = vpack.c.bf16 %v303_v54, %v302_v55 }
 0x218   :  { %840 = vmatmul.mubr.bf16.vlgmr.msra.gmra.mrb[0].mxu1 %v305_v56 }
 0x219   :  { %881 = vmatprep.mubr.msk.bf16.mxu1 %vm1045_vm1, %v1046_v38  ;;  %866 = vmatpush3.bf16.msra.mxu1 %v934_v59 }
 0x21a   :  { %867 = vmatprep.subr.bf16.mxu1 %v1046_v38 }
 0x21d   :  { %868 = vmatpush3.bf16.msra.mxu1 %v935_v60 }
 0x21e   :  { %869 = vmatprep.subr.bf16.mxu1 %v1046_v38 }
 0x221   :  { %870 = vmatpush3.bf16.msra.mxu1 %v936_v61 }
 0x222   :  { %871 = vmatprep.subr.bf16.mxu1 %v1046_v38 }
 0x225   :  { %872 = vmatpush3.bf16.msra.mxu1 %v937_v62 }
 0x226   :  { %873 = vmatprep.subr.bf16.mxu1 %v1046_v38 }
 0x229   :  { %874 = vmatpush3.bf16.msra.mxu1 %v938_v63 }
 0x22a   :  { %875 = vmatprep.subr.bf16.mxu1 %v1046_v38 }
 0x22d   :  { %876 = vmatpush3.bf16.msra.mxu1 %v939_v0 }
 0x22e   :  { %877 = vmatprep.subr.bf16.mxu1 %v1046_v38 }
 0x231   :  { %878 = vmatpush3.bf16.msra.mxu1 %v940_v7 }
 0x232   :  { %879 = vmatprep.subr.bf16.mxu1 %v1046_v38 }
 0x235   :  { %880 = vmatpush3.bf16.msra.mxu1 %v941_v8 }
 0x2eb   :  { %v841_v1 = vpop.f32.mrb[0].mxu1 }
 0x2ec   :  { %v407_v2 = vpop.f32.mrb[1].mxu1 }
 0x2ed   :  { %v842_v3 = vpop.f32.mrb[2].mxu1 }
 0x2ee   :  { %v903_v4 = vpack.c.bf16 %v842_v3, %v841_v1  ;;  %v410_v5 = vpop.f32.mrb[3].mxu1 }
 0x2ef   :  { %v900_v6 = vpack.c.bf16 %v410_v5, %v407_v2 }
 0x2f1   :  { %901 = vmatpush3.bf16.msra.mxu0 %v900_v6 }
 0x2f2   :  { %902 = vmatprep.subr.bf16.mxu0 %v1044_v36 }
 0x2f5   :  { %904 = vmatpush3.bf16.msra.mxu0 %v903_v4 }
 0x2f8   :  { %863 = vmatmul.mubr.msk.f32.vlgmr.msra.gmra.mrb[10].mxu0 %vm202_vm0, %v491_v57 }
 0x3cb   :  { %v570_v10 = vpop.f32.mrb[10].mxu0 }
 0x3cc   :  { %v571_v11 = vadd.f32 %v730_v9, %v570_v10  ;;  %v864_v12 = vpop.f32.mrb[11].mxu0 }
 0x3ce   :  { %v574_v13 = vmax.f32 %v571_v11, 0.0 }
 0x3d0   :  { %v594_v14 = vpack.c.bf16 %v574_v13, %v574_v13 }
 0x3d2   :  { %882 = vmatmul.mubr.bf16.vlgmr.msra.gmra.mrb[4].mxu1 %v594_v14 }
 0x4a5   :  { %v683_v16 = vpop.f32.mrb[4].mxu1 }
 0x4a6   :  { %v684_v17 = vadd.f32 %v733_v15, %v683_v16  ;;  %v883_v18 = vpop.f32.mrb[5].mxu1 }
 0x4a7   :  { %v686_v19 = vpop.f32.mrb[6].mxu1 }
 0x4a8   :  { %689 = vst [vmem:[#allocation8] sm:$0x3] %v684_v17  ;;  %v884_v20 = vpop.f32.mrb[7].mxu1 }
 0x4a9   :  { %1019 = shalt.err (!%p1016_p0)
}
 0x4aa   :  { %s1020_s4 = scalar_lea.hbm %s1159_s5, 32 }
 0x4ab   :  { %p1021_p1 = scmp.ne.s32.totalorder %s1159_s5, %s1020_s4  ;;  %p1024_p2 = scmp.lt.u32.totalorder %s1020_s4, %s1159_s5 }
 0x4ad   :  { %p1026_p3 = pnand %p1024_p2, %p1021_p1 }
 0x4af   :  { %1029 = shalt.err (!%p1026_p3)
}
 0x4b0   :  { %699 = dma.vmem_to_hbm [thread:$0]  %s697_s13, 32, %s1159_s5, [#allocation4]  }
 0x4b1   :  { %1034 = dma.done.wait [#allocation4], 32  }
 0x4b2   :  { %1035 = vsyncadd [#allocation4], 4294967264 }
 0x4b3   :  { %703 = vsyncpa [#allocation3], 1 }
 0x4b4   :  { %704 = vsyncpa [#allocation6], 1 }
 0x4b5   :  { %705 = vsyncpa [#allocation4], 1 }

</bundles_post_ra>
